<compile_context>
chip_gen: v7x
topology: tpu7x:2x2x1
jax: 0.10.0
libtpu: 0.0.40
codegen_flags: <defaults>
</compile_context>

<pallas_src>
import jax
import jax.numpy as jnp
from jax.experimental import pallas as pl
from jax.experimental.pallas import tpu as pltpu


_TARGET_BLOCK_BYTES = 4 * 1024 * 1024   # ~4 MiB per block (good for v7x, fits v5e/v6e)
_SPLIT_BYTES = 512 * 1024               # tensors above this get >=2 grid steps (v7x 2 TCs)
_MIN_PALLAS_ELEMS = 256 * 1024          # below this, pure-jnp (lets XLA fuse it)


def _adaptive_sigmoid_kernel(p_ref, x_ref, o_ref):
    # p_ref (SMEM, f32[4]) = [sigmoid(alpha), 1 - sigmoid(alpha), gamma_m, |gamma_p| + 1]
    s = p_ref[0]
    c = p_ref[1]
    gm = p_ref[2]
    gp = p_ref[3]

    # f32 compute regardless of I/O dtype (v5e EUP/VPU have no bf16).
    x = x_ref[...].astype(jnp.float32)

    a = c * x + s * jnp.tanh(x)                                 # lerp(x, tanh(x), sigmoid(alpha))
    g = jax.nn.sigmoid(x * jnp.where(x < 0.0, gm, gp))          # self gate
    o_ref[...] = (a * g).astype(o_ref.dtype)


def _adaptive_sigmoid_jnp(x, s_alpha, gamma_m, gamma_p_eff):
    xf = x.astype(jnp.float32)
    a = xf + s_alpha * (jnp.tanh(xf) - xf)
    g = jax.nn.sigmoid(xf * jnp.where(xf < 0.0, gamma_m, gamma_p_eff))
    return (a * g).astype(x.dtype)


def adaptive_sigmoid(x, alpha, gamma_m, gamma_p, *, force_pallas=False):
    """x: any shape / f32 or bf16; alpha, gamma_m, gamma_p: float arrays of shape (1,)."""
    # Scalar prep hoisted out of the kernel (done once per call, not per grid step).
    s_alpha = jax.nn.sigmoid(alpha.astype(jnp.float32).reshape(-1)[0])
    gm = gamma_m.astype(jnp.float32).reshape(-1)[0]
    gp_eff = jnp.abs(gamma_p.astype(jnp.float32).reshape(-1)[0]) + 1.0

    orig_shape = x.shape
    orig_dtype = x.dtype
    n = x.size

    # Small-tensor fallback: the real ClassifierHead feeds (batch, 64) / (batch, 8)
    # activations — launching a kernel would be pure overhead and blocks fusion.
    if (not force_pallas) and n < _MIN_PALLAS_ELEMS:
        return _adaptive_sigmoid_jnp(x, s_alpha, gm, gp_eff)

    params = jnp.stack([s_alpha, 1.0 - s_alpha, gm, gp_eff])    # (4,) f32 -> SMEM

    flat = x.reshape(-1)

    # Widest lane width that divides n -> no pad, no output slice (no extra HBM passes).
    lane = None
    for cand in (512, 256, 128):
        if n % cand == 0:
            lane = cand
            break
    pad = 0
    if lane is None:                       # odd size: pad to a multiple of 128 lanes
        lane = 128
        pad = (-n) % lane
        flat = jnp.pad(flat, (0, pad))

    rows = (n + pad) // lane
    itemsize = jnp.dtype(orig_dtype).itemsize
    sublane = max(8, 32 // itemsize)       # f32: 8, bf16: 16, int8/fp8: 32
    bytes_per_row = lane * itemsize
    max_tile_rows = max(sublane,
                        (_TARGET_BLOCK_BYTES // bytes_per_row) // sublane * sublane)

    total_bytes = rows * bytes_per_row
    if rows <= max_tile_rows:
        if total_bytes > _SPLIT_BYTES and rows >= 2 * sublane:
            # Medium tensor: make >=2 grid steps so both v7x TensorCores get work.
            half = -(-rows // 2)
            tile_rows = -(-half // sublane) * sublane
        else:
            tile_rows = rows               # single block equal to full array dims
    else:
        tile_rows = max_tile_rows          # ragged last block handled by Pallas

    grid = (pl.cdiv(rows, tile_rows),)
    x2 = flat.reshape(rows, lane)

    out2 = pl.pallas_call(
        _adaptive_sigmoid_kernel,
        out_shape=jax.ShapeDtypeStruct((rows, lane), orig_dtype),
        grid=grid,
        in_specs=[
            pl.BlockSpec(memory_space=pltpu.SMEM),                 # packed scalars
            pl.BlockSpec((tile_rows, lane), lambda i: (i, 0)),     # x tile
        ],
        out_specs=pl.BlockSpec((tile_rows, lane), lambda i: (i, 0)),
        compiler_params=pltpu.CompilerParams(
            dimension_semantics=("parallel",),       # shards grid across v7x's 2 TCs
            vmem_limit_bytes=32 * 1024 * 1024,       # usage ~16 MiB with 4 MiB blocks
        ),
    )(params, x2)

    if pad:
        return out2.reshape(-1)[:n].reshape(orig_shape)
    return out2.reshape(orig_shape)


if __name__ == "__main__":
    key = jax.random.PRNGKey(0)
    ka, km, kp, kx1, kx2, kx3 = jax.random.split(key, 6)

    # AdaptiveSigmoid init='normal' (scalar shape), matching __init__:
    #   alpha ~ N(0,1), gamma_m ~ N(0,1/3), gamma_p ~ N(1,1/6) stored as |gamma_p - 1|.
    alpha = jax.random.normal(ka, (1,), jnp.float32)
    gamma_m = jax.random.normal(km, (1,), jnp.float32) * (1.0 / 3.0)
    gamma_p_raw = 1.0 + jax.random.normal(kp, (1,), jnp.float32) * (1.0 / 6.0)
    gamma_p = jnp.abs(gamma_p_raw - 1.0)

    def reference(x):
        xf = x.astype(jnp.float32)
        s = jax.nn.sigmoid(alpha[0])
        a = xf + s * (jnp.tanh(xf) - xf)
        gp = jnp.abs(gamma_p[0]) + 1.0
        g = xf * jnp.where(xf < 0.0, gamma_m[0], gp)
        return (a * jax.nn.sigmoid(g)).astype(x.dtype)

    # 1) Head-sized activation (batch=2, HIDDEN_DIM=64): default -> fused jnp fallback.
    x_small = jax.random.normal(kx1, (2, 64), jnp.float32)
    y_small = jax.block_until_ready(adaptive_sigmoid(x_small, alpha, gamma_m, gamma_p))
    assert y_small.shape == x_small.shape and y_small.dtype == x_small.dtype
    assert jnp.allclose(y_small, reference(x_small), atol=1e-5, rtol=1e-5)

    # 1b) Same small input forced through the Pallas kernel (single full block).
    y_small_p = jax.block_until_ready(
        adaptive_sigmoid(x_small, alpha, gamma_m, gamma_p, force_pallas=True))
    assert jnp.allclose(y_small_p, reference(x_small), atol=1e-5, rtol=1e-5)

    # 2) f32 feature-sized tensor (batch=128, BACKBONE_DIM=1152): 2-block grid, no pad.
    x_med = jax.random.normal(kx2, (128, 1152), jnp.float32)
    y_med = jax.block_until_ready(
        adaptive_sigmoid(x_med, alpha, gamma_m, gamma_p, force_pallas=True))
    assert y_med.shape == x_med.shape and y_med.dtype == x_med.dtype
    assert jnp.allclose(y_med, reference(x_med), atol=1e-5, rtol=1e-5)

    # 3) bf16 tensor exercising dtype-dependent sublane tiling (sublane=16, 2 blocks).
    x_bf = jax.random.normal(kx3, (512, 1152), jnp.float32).astype(jnp.bfloat16)
    y_bf = jax.block_until_ready(adaptive_sigmoid(x_bf, alpha, gamma_m, gamma_p))
    assert y_bf.shape == x_bf.shape and y_bf.dtype == jnp.bfloat16
    assert jnp.allclose(y_bf.astype(jnp.float32), reference(x_bf).astype(jnp.float32),
                        atol=2e-2, rtol=2e-2)

    print("KERNEL_OK")
</pallas_src>

<mosaic_0001>
module attributes {stable_mosaic.version = 11 : i64} {
  func.func @_adaptive_sigmoid_kernel(%arg0: i32, %arg1: memref<4xf32, #tpu.memory_space<smem>>, %arg2: memref<1x128xf32, #tpu.memory_space<vmem>>, %arg3: memref<1x128xf32, #tpu.memory_space<vmem>>) attributes {dimension_semantics = [#tpu.dimension_semantics<parallel>], iteration_bounds = array<i64: 1>, scalar_prefetch = 0 : i64, scratch_operands = 0 : i64, tpu.core_type = #tpu.core_type<tc>, window_params = [{transform_indices = @transform_0, window_bounds = array<i64: 4>}, {transform_indices = @transform_1, window_bounds = array<i64: 1, 128>}, {transform_indices = @transform_2, window_bounds = array<i64: 1, 128>}]} {
    %c0 = arith.constant 0 : index
    %0 = memref.load %arg1[%c0] : memref<4xf32, #tpu.memory_space<smem>>
    %c1 = arith.constant 1 : index
    %1 = memref.load %arg1[%c1] : memref<4xf32, #tpu.memory_space<smem>>
    %c2 = arith.constant 2 : index
    %2 = memref.load %arg1[%c2] : memref<4xf32, #tpu.memory_space<smem>>
    %c3 = arith.constant 3 : index
    %3 = memref.load %arg1[%c3] : memref<4xf32, #tpu.memory_space<smem>>
    %c0_0 = arith.constant 0 : index
    %c0_1 = arith.constant 0 : index
    %4 = vector.load %arg2[%c0_0, %c0_1] : memref<1x128xf32, #tpu.memory_space<vmem>>, vector<1x128xf32>
    %5 = vector.broadcast %1 : f32 to vector<1x128xf32>
    %6 = arith.mulf %5, %4 : vector<1x128xf32>
    %7 = math.tanh %4 : vector<1x128xf32>
    %8 = vector.broadcast %0 : f32 to vector<1x128xf32>
    %9 = arith.mulf %8, %7 : vector<1x128xf32>
    %10 = arith.addf %6, %9 : vector<1x128xf32>
    %cst = arith.constant 0.000000e+00 : f32
    %11 = vector.broadcast %cst : f32 to vector<1x128xf32>
    %12 = arith.cmpf olt, %4, %11 : vector<1x128xf32>
    %13 = vector.broadcast %2 : f32 to vector<1x128xf32>
    %14 = vector.broadcast %3 : f32 to vector<1x128xf32>
    %15 = arith.select %12, %13, %14 : vector<1x128xi1>, vector<1x128xf32>
    %16 = arith.mulf %4, %15 : vector<1x128xf32>
    %17 = arith.negf %16 : vector<1x128xf32>
    %18 = math.exp %17 : vector<1x128xf32>
    %cst_2 = arith.constant 1.000000e+00 : f32
    %19 = vector.broadcast %cst_2 : f32 to vector<1x128xf32>
    %20 = arith.addf %19, %18 : vector<1x128xf32>
    %21 = arith.divf %19, %20 : vector<1x128xf32>
    %22 = arith.mulf %10, %21 : vector<1x128xf32>
    %c0_3 = arith.constant 0 : index
    %c0_4 = arith.constant 0 : index
    %23 = vector.load %arg3[%c0_3, %c0_4] : memref<1x128xf32, #tpu.memory_space<vmem>>, vector<1x128xf32>
    tpu.vector_store %arg3[%c0_3, %c0_4], %22 {strides = array<i32>} : memref<1x128xf32, #tpu.memory_space<vmem>>, vector<1x128xf32>,
    return
  }
  func.func @transform_0(%arg0: i32) -> i32 {
    %c0_i32 = arith.constant 0 : i32
    %c0_i32_0 = arith.constant 0 : i32
    return %c0_i32 : i32
  }
  func.func @transform_1(%arg0: i32) -> (i32, i32) {
    %c0_i32 = arith.constant 0 : i32
    %c0_i32_0 = arith.constant 0 : i32
    return %arg0, %c0_i32 : i32, i32
  }
  func.func @transform_2(%arg0: i32) -> (i32, i32) {
    %c0_i32 = arith.constant 0 : i32
    %c0_i32_0 = arith.constant 0 : i32
    return %arg0, %c0_i32 : i32, i32
  }
}

</mosaic_0001>

<bundles_post_ra>
// kernel: tpu_custom_call.1
= control target key start
LH: loop header
LB: loop body
LE: loop exit
PB: predicated region body
PF: predicated region fallthrough
CT: control target
= control target key end

     0   :  { %7 = vsyncpa [#allocation4], 0  ;;  %s154_s0 = inlined_call_operand.hbm [shape: f32[4], index: 0, kind: input, shape index: {}]   ;;  %s155_s1 = inlined_call_operand.vmem [shape: f32[1,128], index: 1, kind: input, shape index: {}]   ;;  %s156_s2 = inlined_call_operand.hbm [shape: f32[1,128], index: 2, kind: output, shape index: {}]  }
   0x1   :  { %8 = vsyncpa [#allocation3], 0  ;;  %s74_s11 = scalar_lea.hbm %s154_s0, 16 }
   0x2   :  { %p75_p0 = scmp.ne.s32.totalorder %s154_s0, %s74_s11  ;;  %p78_p1 = scmp.lt.u32.totalorder %s74_s11, %s154_s0 }
   0x4   :  { %p80_p2 = pnand %p78_p1, %p75_p0 }
   0x6   :  { %83 = shalt.err (!%p80_p2)
}
   0x7   :  { %s110_s16 = smov [#allocation2]  }
   0x8   :  { %16 = dma.hbm_to_smem %s154_s0, 16, %s110_s16, [#allocation4]  }
   0x9   :  { %106 = dma.done.wait [#allocation4], 16  }
   0xa   :  { %107 = vsyncadd [#allocation4], 4294967280 }
   0xb   :  { %22 = sfence }
   0xc   :  { %s63_s19 = sld [smem:[#allocation2 + $0x2]]  ;;  %s64_s20 = sld [smem:[#allocation2 + $0x3]]  ;;  %v27_v0 = vld [vmem:[%s155_s1] sm:$0x1] }
   0xd   :  { %vm34_vm0 = vcmp.lt.f32.partialorder %v27_v0, 0.0  ;;  %s23_s23 = sld [smem:[#allocation2]]  ;;  %s62_s24 = sld [smem:[#allocation2 + $0x1]] }
   0xe   :  { %s111_s0 = smov [#allocation5]  }
   0xf   :  { %s53_s1 = sshll.u32 %s111_s0, 4  ;;  %s54_s1 = int_to_ptr.vmem [resolvable:$true] %s53_s1 }
  0x10   :  { %s84_s25 = scalar_lea.vmem %s54_s1, 16  ;;  %s88_s26 = scalar_lea.vmem %s54_s1, 32 }
  0x11   :  { %p85_p3 = scmp.ne.s32.totalorder %s54_s1, %s84_s25  ;;  %p89_p4 = scmp.lt.s32.totalorder %s54_s1, %s54_s1 }
  0x12   :  { %v35_v1 = vstv %s63_s19  ;;  %v36_v2 = vstv %s64_s20  ;;  %p90_p5 = scmp.lt.s32.totalorder %s88_s26, %s84_s25 }
  0x13   :  { %v37_v3 = vsel %vm34_vm0, %v35_v1, %v36_v2  ;;  %v28_v9 = vstv %s62_s24  ;;  %v31_v10 = vstv %s23_s23 }
  0x14   :  { %v38_v4 = vmul.f32 %v37_v3, %v27_v0  ;;  %v29_v11 = vmul.f32 %v28_v9, %v27_v0  ;;  %p91_p6 = por %p90_p5, %p89_p4 }
  0x16   :  { %v65_v5 = vmul.f32 -1.442695, %v38_v4  ;;  %p92_p7 = pnand %p91_p6, %p85_p3 }
  0x18   :  { %68 = vpow2.f32 %v65_v5 }
  0x19   :  { %70 = vtanh.f32 %v27_v0 }
  0x22   :  { %v69_v6 = vpop.eup %68 }
  0x23   :  { %v42_v7 = vadd.f32 1.0, %v69_v6  ;;  %v71_v8 = vpop.eup %70 }
  0x24   :  { %v32_v12 = vmul.f32 %v71_v8, %v31_v10 }
  0x25   :  { %72 = vrcp.f32 %v42_v7 }
  0x26   :  { %v33_v13 = vadd.f32 %v32_v12, %v29_v11 }
  0x2f   :  { %v73_v14 = vpop.eup %72 }
  0x30   :  { %v45_v15 = vmul.f32 %v73_v14, %v33_v13 }
  0x32   :  { %46 = vst [vmem:[#allocation5] sm:$0x1] %v45_v15 }
  0x33   :  { %95 = shalt.err (!%p92_p7)
}
  0x34   :  { %s96_s29 = scalar_lea.hbm %s156_s2, 16 }
  0x35   :  { %p97_p8 = scmp.ne.s32.totalorder %s156_s2, %s96_s29  ;;  %p100_p9 = scmp.lt.u32.totalorder %s96_s29, %s156_s2 }
  0x37   :  { %p102_p10 = pnand %p100_p9, %p97_p8 }
  0x39   :  { %105 = shalt.err (!%p102_p10)
}
  0x3a   :  { %56 = dma.vmem_to_hbm [thread:$0]  %s54_s1, 16, %s156_s2, [#allocation3]  }
  0x3b   :  { %108 = dma.done.wait [#allocation3], 16  }
  0x3c   :  { %109 = vsyncadd [#allocation3], 4294967280 }
  0x3d   :  { %60 = vsyncpa [#allocation3], 1 }
  0x3e   :  { %61 = vsyncpa [#allocation4], 1 }

</bundles_post_ra>
